<compile_context>
chip_gen: v5e
topology: v5e:2x2
jax: 0.10.0
libtpu: 0.0.40
codegen_flags: <defaults>
</compile_context>

<pallas_src>
import functools

import jax
import jax.numpy as jnp
import numpy as np
from jax import lax
from jax.experimental import pallas as pl
from jax.experimental.pallas import tpu as pltpu


def _round_up(x, m):
    return ((x + m - 1) // m) * m


def _pick_tile(dim, max_tile, quantum=128):
    """dim is a multiple of `quantum`. Pick a tile (multiple of quantum,
    <= max_tile) minimizing round_up(dim, tile); prefer larger tiles on ties."""
    max_tile = max(quantum, max_tile)
    best_t, best_pad = quantum, _round_up(dim, quantum)
    t = quantum
    while t <= max_tile:
        pad = _round_up(dim, t)
        if pad < best_pad or (pad == best_pad and t > best_t):
            best_t, best_pad = t, pad
        t += quantum
    return best_t, best_pad


# ---------------------------------------------------------------------------
# Kernel 1: weight fake-quant (UniformAffineQuantizer.forward), run ONCE over
# the flattened (K, Cout) weight.  delta / zero_point are (1, Cout) rows
# (channel_wise weight quant supported); 1/delta is precomputed (no divide).
# Output is emitted directly in the matmul compute dtype (bf16 by default).
# ---------------------------------------------------------------------------
def _weight_fakequant_kernel(w_ref, inv_d_ref, d_ref, zp_ref, o_ref, *, n_levels):
    w = w_ref[...]
    zp = zp_ref[...]
    # x_int = round(x / delta) + zp ; x_q = clamp(x_int, 0, n_levels-1)
    # x_dq  = (x_q - zp) * delta      (forward of round_ste is just round)
    w_int = jnp.round(w * inv_d_ref[...]) + zp
    w_q = jnp.clip(w_int, 0.0, n_levels - 1.0)
    o_ref[...] = ((w_q - zp) * d_ref[...]).astype(o_ref.dtype)


def _fake_quant_weight(w2d, inv_delta_row, delta_row, zp_row, n_levels, *,
                       tile_k, out_dtype):
    K_pad, Cout_pad = w2d.shape
    kernel = functools.partial(_weight_fakequant_kernel, n_levels=float(n_levels))
    return pl.pallas_call(
        kernel,
        out_shape=jax.ShapeDtypeStruct((K_pad, Cout_pad), out_dtype),
        grid_spec=pltpu.PrefetchScalarGridSpec(
            num_scalar_prefetch=0,
            grid=(K_pad // tile_k,),
            in_specs=[
                pl.BlockSpec((tile_k, Cout_pad), lambda k: (k, 0)),
                pl.BlockSpec((1, Cout_pad), lambda k: (0, 0)),
                pl.BlockSpec((1, Cout_pad), lambda k: (0, 0)),
                pl.BlockSpec((1, Cout_pad), lambda k: (0, 0)),
            ],
            out_specs=pl.BlockSpec((tile_k, Cout_pad), lambda k: (k, 0)),
        ),
        compiler_params=pltpu.CompilerParams(dimension_semantics=("parallel",)),
    )(w2d, inv_delta_row, delta_row, zp_row)


# ---------------------------------------------------------------------------
# Kernel 2: matmul + bias (+ optional act fake-quant).
# Grid (j, i, k): j = Cout tiles (outermost, parallel), i = M tiles (parallel),
# k = K tiles (innermost, arbitrary).  The f32 output block is resident across
# k and doubles as the accumulator; bias folds into the k==0 init.
# If weight_full_k, w_ref holds the full-K slab (resident across i AND k) and
# is sliced per k step; otherwise it is a (tile_k, tile_n) block.
# ---------------------------------------------------------------------------
def _matmul_bias_kernel(p_ref, w_ref, b_ref, o_ref, *,
                        tile_k, weight_full_k, use_act_quant,
                        inv_a_delta, a_delta, a_zp, a_n_levels):
    k = pl.program_id(2)

    @pl.when(k == 0)
    def _():
        o_ref[...] = jnp.broadcast_to(b_ref[...], o_ref.shape)

    if weight_full_k:
        koff = pl.multiple_of(k * tile_k, tile_k)
        w_blk = w_ref[pl.ds(koff, tile_k), :]
    else:
        w_blk = w_ref[...]

    o_ref[...] += jnp.dot(p_ref[...], w_blk, preferred_element_type=jnp.float32)

    # activation_function = StraightThrough() -> identity; act quant only when
    # use_act_quant and not disable_act_quant.
    if use_act_quant:
        @pl.when(k == pl.num_programs(2) - 1)
        def _():
            acc = o_ref[...]
            a_int = jnp.round(acc * inv_a_delta) + a_zp
            a_q = jnp.clip(a_int, 0.0, a_n_levels - 1.0)
            o_ref[...] = (a_q - a_zp) * a_delta


def quant_module_conv2d(x, weight, bias=None, *,
                        stride=1, padding=1,
                        use_weight_quant=True,
                        w_delta=1.0, w_zero_point=0.0, w_n_bits=8,
                        use_act_quant=False, disable_act_quant=True,
                        a_delta=1.0, a_zero_point=0.0, a_n_bits=8,
                        tile_m=512, tile_n=256, tile_k=1024,
                        compute_dtype=jnp.bfloat16,
                        patches_buffers=2,
                        out_layout="NCHW"):
    """QuantModule.forward for an nn.Conv2d org_module.

    x:      (N, Cin, H, W)      float32 (NCHW, PyTorch convention)
    weight: (Cout, Cin, KH, KW) float32 (OIHW)
    bias:   (Cout,) float32 or None
    w_delta / w_zero_point: python scalars or (Cout,) arrays (channel_wise).
    a_delta / a_zero_point: python scalars (only used when act quant enabled).
    """
    N, C, H, W = x.shape
    Cout, Cin, KH, KW = weight.shape
    assert Cin == C, "groups != 1 not implemented"  # TODO(synk): grouped / dilated conv
    sh, sw = (stride, stride) if isinstance(stride, int) else tuple(stride)
    ph, pw = (padding, padding) if isinstance(padding, int) else tuple(padding)
    OH = (H + 2 * ph - KH) // sh + 1
    OW = (W + 2 * pw - KW) // sw + 1

    # ---- im2col in bf16, directly in (M, K) layout --------------------------
    # TODO(synk): implicit GEMM (in-kernel shifted-window DMA) to avoid the
    # KH*KW activation blow-up entirely on bandwidth-limited parts.
    x_nhwc = jnp.transpose(x, (0, 2, 3, 1)).astype(compute_dtype)     # (N,H,W,C)
    xp = jnp.pad(x_nhwc, ((0, 0), (ph, ph), (pw, pw), (0, 0)))
    wins = []
    for i in range(KH):
        for j in range(KW):
            wins.append(xp[:, i:i + sh * OH:sh, j:j + sw * OW:sw, :])
    # K ordering = (kh, kw, cin); weight flatten below matches.
    patches = jnp.concatenate(wins, axis=-1).reshape(N * OH * OW, KH * KW * C)

    M, K = patches.shape

    # ---- lane-dense padding and tile sizing (minimize overshoot) ------------
    tile_m, M_pad = _pick_tile(_round_up(M, 128), min(tile_m, _round_up(M, 128)))
    tile_k, K_pad = _pick_tile(_round_up(K, 128), min(tile_k, _round_up(K, 128)))
    tile_n, Cout_pad = _pick_tile(_round_up(Cout, 128),
                                  min(tile_n, _round_up(Cout, 128)))
    # v7x has 2 TensorCores: keep at least 2 parallel (i, j) tiles.
    if (M_pad // tile_m) * (Cout_pad // tile_n) < 2 and tile_m >= 256:
        tile_m //= 2

    patches = jnp.pad(patches, ((0, M_pad - M), (0, K_pad - K)))

    # weight flattened to (K, Cout) with (kh, kw, cin) row ordering
    w2d = jnp.transpose(weight, (2, 3, 1, 0)).reshape(KH * KW * Cin, Cout)
    w2d = jnp.pad(w2d.astype(jnp.float32), ((0, K_pad - K), (0, Cout_pad - Cout)))

    if bias is None:
        bias = jnp.zeros((Cout,), jnp.float32)
    b_row = jnp.pad(bias.astype(jnp.float32).reshape(1, Cout),
                    ((0, 0), (0, Cout_pad - Cout)))

    # ---- weight fake-quant (hoisted: runs once, emits compute_dtype) --------
    if use_weight_quant:
        n_levels = 2 ** w_n_bits
        delta = jnp.asarray(w_delta, jnp.float32).reshape(-1)
        zp = jnp.asarray(w_zero_point, jnp.float32).reshape(-1)
        if delta.shape[0] == 1:
            delta = jnp.broadcast_to(delta, (Cout,))
        if zp.shape[0] == 1:
            zp = jnp.broadcast_to(zp, (Cout,))
        # pad with delta=1 / zp=0 so padded columns (zeros) stay exactly zero
        delta_row = jnp.pad(delta.reshape(1, Cout),
                            ((0, 0), (0, Cout_pad - Cout)), constant_values=1.0)
        zp_row = jnp.pad(zp.reshape(1, Cout), ((0, 0), (0, Cout_pad - Cout)))
        inv_delta_row = 1.0 / delta_row
        w2d = _fake_quant_weight(w2d, inv_delta_row, delta_row, zp_row, n_levels,
                                 tile_k=tile_k, out_dtype=compute_dtype)
    else:
        w2d = w2d.astype(compute_dtype)

    patches = patches.astype(compute_dtype)

    # Keep the whole K extent of the weight resident in VMEM (fetched once per
    # Cout tile) when the double-buffered slab is small enough for all gens
    # (v7x scoped default ~32 MiB); otherwise stream (tile_k, tile_n) blocks.
    bytes_per = jnp.dtype(compute_dtype).itemsize
    weight_full_k = (2 * K_pad * tile_n * bytes_per) <= (8 << 20)

    act_quant_on = bool(use_act_quant and not disable_act_quant)
    # NOTE: act-quant params are baked as compile-time scalars (per-tensor);
    # pass them via SMEM if they need to vary without recompiling.
    kernel = functools.partial(
        _matmul_bias_kernel,
        tile_k=tile_k, weight_full_k=weight_full_k,
        use_act_quant=act_quant_on,
        inv_a_delta=float(1.0 / a_delta), a_delta=float(a_delta),
        a_zp=float(a_zero_point), a_n_levels=float(2 ** a_n_bits))

    if weight_full_k:
        w_spec = pl.BlockSpec((K_pad, tile_n), lambda j, i, k: (0, j))
    else:
        w_spec = pl.BlockSpec((tile_k, tile_n), lambda j, i, k: (k, j))

    if patches_buffers != 2:   # e.g. 3 on v5e if the patches DMA is exposed
        p_spec = pl.BlockSpec((tile_m, tile_k), lambda j, i, k: (i, k),
                              pipeline_mode=pl.Buffered(patches_buffers))
    else:
        p_spec = pl.BlockSpec((tile_m, tile_k), lambda j, i, k: (i, k))

    out2d = pl.pallas_call(
        kernel,
        out_shape=jax.ShapeDtypeStruct((M_pad, Cout_pad), jnp.float32),
        grid_spec=pltpu.PrefetchScalarGridSpec(
            num_scalar_prefetch=0,
            grid=(Cout_pad // tile_n, M_pad // tile_m, K_pad // tile_k),
            in_specs=[
                p_spec,                                            # patches
                w_spec,                                            # weight
                pl.BlockSpec((1, tile_n), lambda j, i, k: (0, j)), # bias row
            ],
            out_specs=pl.BlockSpec((tile_m, tile_n), lambda j, i, k: (i, j)),
        ),
        compiler_params=pltpu.CompilerParams(
            dimension_semantics=("parallel", "parallel", "arbitrary")),
    )(patches, w2d, b_row)

    out_nhwc = out2d[:M, :Cout].reshape(N, OH, OW, Cout)
    if out_layout == "NHWC":       # avoids one full-tensor repack when allowed
        return out_nhwc
    return jnp.transpose(out_nhwc, (0, 3, 1, 2))                   # NCHW


def _fake_quant_ref(x, delta, zp, n_bits):
    x_int = jnp.round(x / delta) + zp
    x_q = jnp.clip(x_int, 0.0, 2 ** n_bits - 1.0)
    return (x_q - zp) * delta


if __name__ == "__main__":
    key = jax.random.PRNGKey(0)
    kx, kw, kb = jax.random.split(key, 3)

    # org_module = nn.Conv2d(4, 8, kernel_size=3, stride=1, padding=1)
    N, Cin, H, W = 2, 4, 16, 16
    Cout, KH, KW = 8, 3, 3
    x = jax.random.normal(kx, (N, Cin, H, W), jnp.float32)
    weight = jax.random.normal(kw, (Cout, Cin, KH, KW), jnp.float32) * 0.1
    bias = jax.random.normal(kb, (Cout,), jnp.float32) * 0.1

    # Deterministic "calibrated" quantizer params (min-max, tensor-wise),
    # mirroring UniformAffineQuantizer.calculate_qparams.
    n_bits = 8
    w_min = jnp.minimum(weight.min(), 0.0)
    w_max = jnp.maximum(weight.max(), 0.0)
    w_delta = jnp.maximum((w_max - w_min) / (2 ** n_bits - 1), 1e-8)
    w_zp = jnp.clip(jnp.round(-w_min / w_delta), 0, 2 ** n_bits - 1)

    out = quant_module_conv2d(
        x, weight, bias,
        stride=1, padding=1,
        use_weight_quant=True,
        w_delta=float(w_delta), w_zero_point=float(w_zp), w_n_bits=n_bits,
        use_act_quant=False, disable_act_quant=True,  # QuantModule defaults
    )
    out = jax.block_until_ready(out)

    # Pure-JAX reference with the same operand precision (bf16 operands,
    # f32 accumulation) so only summation order differs.
    w_fq = _fake_quant_ref(weight, float(w_delta), float(w_zp), n_bits)
    w_bf = w_fq.astype(jnp.bfloat16).astype(jnp.float32)
    x_bf = x.astype(jnp.bfloat16).astype(jnp.float32)
    ref = lax.conv_general_dilated(
        x_bf, w_bf, window_strides=(1, 1), padding=((1, 1), (1, 1)),
        dimension_numbers=("NCHW", "OIHW", "NCHW"),
        precision=lax.Precision.HIGHEST,
    ) + bias[None, :, None, None]

    np.testing.assert_allclose(np.asarray(out), np.asarray(ref),
                               rtol=5e-3, atol=5e-3)
    print("KERNEL_OK")
</pallas_src>

<mosaic_0001>
module attributes {stable_mosaic.version = 11 : i64} {
  func.func @_weight_fakequant_kernel(%arg0: i32, %arg1: memref<128x128xf32, #tpu.memory_space<vmem>>, %arg2: memref<1x128xf32, #tpu.memory_space<vmem>>, %arg3: memref<1x128xf32, #tpu.memory_space<vmem>>, %arg4: memref<1x128xf32, #tpu.memory_space<vmem>>, %arg5: memref<128x128xbf16, #tpu.memory_space<vmem>>) attributes {dimension_semantics = [#tpu.dimension_semantics<parallel>], iteration_bounds = array<i64: 1>, scalar_prefetch = 0 : i64, scratch_operands = 0 : i64, tpu.core_type = #tpu.core_type<tc>, window_params = [{transform_indices = @transform_0, window_bounds = array<i64: 128, 128>}, {pipeline_mode = #tpu.pipeline_mode<synchronous>, transform_indices = @transform_1, window_bounds = array<i64: 1, 128>}, {pipeline_mode = #tpu.pipeline_mode<synchronous>, transform_indices = @transform_2, window_bounds = array<i64: 1, 128>}, {pipeline_mode = #tpu.pipeline_mode<synchronous>, transform_indices = @transform_3, window_bounds = array<i64: 1, 128>}, {transform_indices = @transform_4, window_bounds = array<i64: 128, 128>}]} {
    %c0 = arith.constant 0 : index
    %c0_0 = arith.constant 0 : index
    %0 = vector.load %arg1[%c0, %c0_0] : memref<128x128xf32, #tpu.memory_space<vmem>>, vector<128x128xf32>
    %c0_1 = arith.constant 0 : index
    %c0_2 = arith.constant 0 : index
    %1 = vector.load %arg4[%c0_1, %c0_2] : memref<1x128xf32, #tpu.memory_space<vmem>>, vector<1x128xf32>
    %c0_3 = arith.constant 0 : index
    %c0_4 = arith.constant 0 : index
    %2 = vector.load %arg2[%c0_3, %c0_4] : memref<1x128xf32, #tpu.memory_space<vmem>>, vector<1x128xf32>
    %3 = vector.broadcast %2 : vector<1x128xf32> to vector<128x128xf32>
    %4 = arith.mulf %0, %3 : vector<128x128xf32>
    %5 = math.roundeven %4 : vector<128x128xf32>
    %6 = vector.broadcast %1 : vector<1x128xf32> to vector<128x128xf32>
    %7 = arith.addf %5, %6 : vector<128x128xf32>
    %cst = arith.constant 0.000000e+00 : f32
    %cst_5 = arith.constant 2.550000e+02 : f32
    %8 = vector.broadcast %cst : f32 to vector<128x128xf32>
    %9 = arith.maximumf %8, %7 : vector<128x128xf32>
    %10 = vector.broadcast %cst_5 : f32 to vector<128x128xf32>
    %11 = arith.minimumf %10, %9 : vector<128x128xf32>
    %12 = vector.broadcast %1 : vector<1x128xf32> to vector<128x128xf32>
    %13 = arith.subf %11, %12 : vector<128x128xf32>
    %c0_6 = arith.constant 0 : index
    %c0_7 = arith.constant 0 : index
    %14 = vector.load %arg3[%c0_6, %c0_7] : memref<1x128xf32, #tpu.memory_space<vmem>>, vector<1x128xf32>
    %15 = vector.broadcast %14 : vector<1x128xf32> to vector<128x128xf32>
    %16 = arith.mulf %13, %15 : vector<128x128xf32>
    %17 = arith.truncf %16 : vector<128x128xf32> to vector<128x128xbf16>
    %c0_8 = arith.constant 0 : index
    %c0_9 = arith.constant 0 : index
    %18 = vector.load %arg5[%c0_8, %c0_9] : memref<128x128xbf16, #tpu.memory_space<vmem>>, vector<128x128xbf16>
    tpu.vector_store %arg5[%c0_8, %c0_9], %17 {strides = array<i32>} : memref<128x128xbf16, #tpu.memory_space<vmem>>, vector<128x128xbf16>,
    return
  }
  func.func @transform_0(%arg0: i32) -> (i32, i32) {
    %c0_i32 = arith.constant 0 : i32
    %c0_i32_0 = arith.constant 0 : i32
    return %arg0, %c0_i32 : i32, i32
  }
  func.func @transform_1(%arg0: i32) -> (i32, i32) {
    %c0_i32 = arith.constant 0 : i32
    %c0_i32_0 = arith.constant 0 : i32
    %c0_i32_1 = arith.constant 0 : i32
    return %c0_i32, %c0_i32_0 : i32, i32
  }
  func.func @transform_2(%arg0: i32) -> (i32, i32) {
    %c0_i32 = arith.constant 0 : i32
    %c0_i32_0 = arith.constant 0 : i32
    %c0_i32_1 = arith.constant 0 : i32
    return %c0_i32, %c0_i32_0 : i32, i32
  }
  func.func @transform_3(%arg0: i32) -> (i32, i32) {
    %c0_i32 = arith.constant 0 : i32
    %c0_i32_0 = arith.constant 0 : i32
    %c0_i32_1 = arith.constant 0 : i32
    return %c0_i32, %c0_i32_0 : i32, i32
  }
  func.func @transform_4(%arg0: i32) -> (i32, i32) {
    %c0_i32 = arith.constant 0 : i32
    %c0_i32_0 = arith.constant 0 : i32
    return %arg0, %c0_i32 : i32, i32
  }
}

</mosaic_0001>

<bundles_post_ra>
// kernel: tpu_custom_call.1
= control target key start
LH: loop header
LB: loop body
LE: loop exit
PB: predicated region body
PF: predicated region fallthrough
CT: control target
= control target key end

     0   :  { %9 = vsyncpa [#allocation3], 0  ;;  %s728_s0 = inlined_call_operand.hbm [shape: f32[128,128], index: 0, kind: input, shape index: {}]   ;;  %s729_s1 = inlined_call_operand.hbm [shape: f32[1,128], index: 1, kind: input, shape index: {}]   ;;  %s730_s2 = inlined_call_operand.vmem [shape: f32[1,128], index: 2, kind: input, shape index: {}]   ;;  %s731_s3 = inlined_call_operand.vmem [shape: f32[1,128], index: 3, kind: input, shape index: {}]   ;;  %s732_s4 = inlined_call_operand.hbm [shape: bf16[128,128], index: 4, kind: output, shape index: {}]  }
   0x1   :  { %10 = vsyncpa [#allocation6], 0 }
   0x2   :  { %11 = vsyncpa [#allocation4], 0  ;;  %s16_s17 = sshll.u32 %s728_s0, 4  ;;  %s503_s18 = smov [#allocation2]   ;;  %s17_s17 = int_to_ptr.hbm [resolvable:$true] %s16_s17 }
   0x3   :  { %s18_s19 = sshll.u32 %s503_s18, 4  ;;  %s30_s22 = sshll.u32 %s729_s1, 4  ;;  %s19_s19 = int_to_ptr.vmem [resolvable:$true] %s18_s19  ;;  %s31_s22 = int_to_ptr.hbm [resolvable:$true] %s30_s22 }
   0x4   :  { %s504_s23 = smov 128   ;;  %s505_s24 = smov 8  }
   0x5   :  { %24 = dma.hbm_to_vmem [thread:$0]  %s17_s17, 2048, %s19_s19, [#allocation3], %s504_s23, %s504_s23, %s505_s24  }
   0x6   :  { %s506_s25 = smov [#allocation5]  }
   0x7   :  { %s32_s26 = sshll.u32 %s506_s25, 4  ;;  %s33_s26 = int_to_ptr.vmem [resolvable:$true] %s32_s26 }
   0x8   :  { %35 = dma.hbm_to_vmem [thread:$0]  %s31_s22, 16, %s33_s26, [#allocation6]  }
   0x9   :  { %497 = dma.done.wait [#allocation3], 2048  }
   0xa   :  { %498 = vsyncadd [#allocation3], 4294965248 }
   0xb   :  { %499 = dma.done.wait [#allocation6], 16  }
   0xc   :  { %500 = vsyncadd [#allocation6], 4294967280  ;;  %v48_v0 = vld [vmem:[#allocation2] sm:$0xff]  ;;  %v49_v1 = vld [vmem:[#allocation2 + $0x8] sm:$0xff]  ;;  %s226_s5 = sshll.u32 %s732_s4, 4  ;;  %s508_s6 = smov 64   ;;  %s227_s5 = int_to_ptr.hbm [resolvable:$true] %s226_s5 }
   0xd   :  { %v541_v2 = vld [vmem:[#allocation5] ss:$0 sm:$0xff]  ;;  %v50_v3 = vld [vmem:[#allocation2 + $0x10] sm:$0xff]  ;;  %v51_v6 = vld [vmem:[#allocation2 + $0x18] sm:$0xff]  ;;  %s509_s7 = smov 4  }
   0xe   :  { %v69_v4 = vmul.f32 %v541_v2, %v48_v0  ;;  %v70_v5 = vmul.f32 %v541_v2, %v49_v1  ;;  %v71_v7 = vmul.f32 %v541_v2, %v50_v3  ;;  %v52_v8 = vld [vmem:[#allocation2 + $0x20] sm:$0xff]  ;;  %v53_v9 = vld [vmem:[#allocation2 + $0x28] sm:$0xff]  ;;  %v72_v10 = vmul.f32 %v541_v2, %v51_v6  ;;  %v54_v50 = vld [vmem:[#allocation2 + $0x30] sm:$0xff] }
   0xf   :  { %v548_v11 = vmul.f32 %v541_v2, %v52_v8  ;;  %v551_v12 = vmul.f32 %v541_v2, %v53_v9  ;;  %v564_v26 = vld [vmem:[%s731_s3] ss:$0 sm:$0xff]  ;;  %v55_v55 = vld [vmem:[#allocation2 + $0x38] sm:$0xff]  ;;  %v75_v63 = vmul.f32 %v541_v2, %v54_v50  ;;  %v57_v40 = vld [vmem:[#allocation2 + $0x48] sm:$0xff] }
  0x10   :  { %v287_v13 = vand.u32 2147483647, %v69_v4  ;;  %v289_v14 = vcvt.f32.s32 %v69_v4  ;;  %v292_v15 = vand.u32 2147483648, %v69_v4  ;;  %v295_v16 = vand.u32 2147483647, %v70_v5  ;;  %v56_v36 = vld [vmem:[#allocation2 + $0x40] sm:$0xff] }
  0x11   :  { %v297_v17 = vcvt.f32.s32 %v70_v5  ;;  %v300_v18 = vand.u32 2147483648, %v70_v5  ;;  %v303_v19 = vand.u32 2147483647, %v71_v7  ;;  %v305_v20 = vcvt.f32.s32 %v71_v7  ;;  %v606_v6 = vld [vmem:[%s730_s2] ss:$0 sm:$0xff]  ;;  %s507_s2 = smov [#allocation7]  }
  0x12   :  { %vm553_vm0 = vcmp.lt.f32.partialorder %v287_v13, 8388608.0  ;;  %v290_v22 = vcvt.s32.f32 %v289_v14  ;;  %vm557_vm1 = vcmp.lt.f32.partialorder %v295_v16, 8388608.0  ;;  %v308_v24 = vand.u32 2147483648, %v71_v7  ;;  %s224_s28 = sshll.u32 %s507_s2, 4  ;;  %s225_s28 = int_to_ptr.vmem [resolvable:$true] %s224_s28 }
  0x13   :  { %v298_v25 = vcvt.s32.f32 %v297_v17  ;;  %vm566_vm2 = vcmp.lt.f32.partialorder %v303_v19, 8388608.0  ;;  %v306_v28 = vcvt.s32.f32 %v305_v20  ;;  %v311_v29 = vand.u32 2147483647, %v72_v10 }
  0x14   :  { %v291_v30 = vand.u32 2147483647, %v290_v22  ;;  %v313_v31 = vcvt.f32.s32 %v72_v10  ;;  %v316_v32 = vand.u32 2147483648, %v72_v10  ;;  %v319_v33 = vand.u32 2147483647, %v548_v11 }
  0x15   :  { %v299_v34 = vand.u32 2147483647, %v298_v25  ;;  %v307_v35 = vand.u32 2147483647, %v306_v28  ;;  %vm571_vm3 = vcmp.lt.f32.partialorder %v311_v29, 8388608.0  ;;  %v321_v37 = vcvt.f32.s32 %v548_v11 }
  0x16   :  { %v293_v38 = vor.u32 %v292_v15, %v291_v30  ;;  %v314_v39 = vcvt.s32.f32 %v313_v31  ;;  %vm576_vm4 = vcmp.lt.f32.partialorder %v319_v33, 8388608.0  ;;  %v324_v41 = vand.u32 2147483648, %v548_v11 }
  0x17   :  { %v301_v42 = vor.u32 %v300_v18, %v299_v34  ;;  %v309_v43 = vor.u32 %v308_v24, %v307_v35  ;;  %v322_v44 = vcvt.s32.f32 %v321_v37  ;;  %v327_v45 = vand.u32 2147483647, %v551_v12 }
  0x18   :  { %v294_v46 = vsel %vm553_vm0, %v293_v38, %v69_v4  ;;  %v315_v47 = vand.u32 2147483647, %v314_v39  ;;  %v329_v48 = vcvt.f32.s32 %v551_v12  ;;  %v332_v49 = vand.u32 2147483648, %v551_v12 }
  0x19   :  { %v302_v51 = vsel %vm557_vm1, %v301_v42, %v70_v5  ;;  %v104_v52 = vadd.f32 %v564_v26, %v294_v46  ;;  %v310_v53 = vsel %vm566_vm2, %v309_v43, %v71_v7  ;;  %v323_v54 = vand.u32 2147483647, %v322_v44 }
  0x1a   :  { %v105_v56 = vadd.f32 %v564_v26, %v302_v51  ;;  %v317_v57 = vor.u32 %v316_v32, %v315_v47  ;;  %v106_v58 = vadd.f32 %v564_v26, %v310_v53  ;;  %vm593_vm5 = vcmp.lt.f32.partialorder %v327_v45, 8388608.0 }
  0x1b   :  { %v120_v60 = vmax.f32 %v104_v52, 0.0  ;;  %v325_v61 = vor.u32 %v324_v41, %v323_v54  ;;  %v330_v62 = vcvt.s32.f32 %v329_v48  ;;  %v601_v4 = vmul.f32 %v541_v2, %v55_v55  ;;  %v58_v48 = vld [vmem:[#allocation2 + $0x50] sm:$0xff] }
  0x1c   :  { %v121_v0 = vmax.f32 %v105_v56, 0.0  ;;  %v318_v1 = vsel %vm571_vm3, %v317_v57, %v72_v10  ;;  %v122_v3 = vmax.f32 %v106_v58, 0.0  ;;  %v335_v15 = vand.u32 2147483647, %v75_v63 }
  0x1d   :  { %v136_v5 = vmin.f32 %v120_v60, 255.0  ;;  %v107_v7 = vadd.f32 %v564_v26, %v318_v1  ;;  %v326_v8 = vsel %vm576_vm4, %v325_v61, %v548_v11  ;;  %v331_v9 = vand.u32 2147483647, %v330_v62  ;;  %v59_v60 = vld [vmem:[#allocation2 + $0x58] sm:$0xff] }
  0x1e   :  { %v137_v13 = vmin.f32 %v121_v0, 255.0  ;;  %v138_v14 = vmin.f32 %v122_v3, 255.0  ;;  %v108_v10 = vadd.f32 %v564_v26, %v326_v8  ;;  %v337_v19 = vcvt.f32.s32 %v75_v63 }
  0x1f   :  { %v152_v16 = vsub.f32 %v136_v5, %v564_v26  ;;  %v123_v17 = vmax.f32 %v107_v7, 0.0  ;;  %v333_v18 = vor.u32 %v332_v49, %v331_v9  ;;  %vm616_vm6 = vcmp.lt.f32.partialorder %v335_v15, 8388608.0 }
  0x20   :  { %v153_v20 = vsub.f32 %v137_v13, %v564_v26  ;;  %v154_v21 = vsub.f32 %v138_v14, %v564_v26  ;;  %v124_v22 = vmax.f32 %v108_v10, 0.0  ;;  %v338_v27 = vcvt.s32.f32 %v337_v19 }
  0x21   :  { %v172_v11 = vmul.f32 %v606_v6, %v152_v16  ;;  %v139_v24 = vmin.f32 %v123_v17, 255.0  ;;  %v334_v25 = vsel %vm593_vm5, %v333_v18, %v551_v12  ;;  %v340_v34 = vand.u32 2147483648, %v75_v63 }
  0x22   :  { %v173_v28 = vmul.f32 %v606_v6, %v153_v20  ;;  %v174_v29 = vmul.f32 %v606_v6, %v154_v21  ;;  %v109_v30 = vadd.f32 %v564_v26, %v334_v25  ;;  %v140_v31 = vmin.f32 %v124_v22, 255.0 }
  0x23   :  { %v155_v32 = vsub.f32 %v139_v24, %v564_v26  ;;  %v339_v33 = vand.u32 2147483647, %v338_v27  ;;  %v343_v35 = vand.u32 2147483647, %v601_v4  ;;  %v345_v12 = vcvt.f32.s32 %v601_v4 }
  0x24   :  { %v243_v37 = vpack.c.bf16 %v173_v28, %v172_v11  ;;  %v125_v38 = vmax.f32 %v109_v30, 0.0  ;;  %v156_v39 = vsub.f32 %v140_v31, %v564_v26  ;;  %v348_v46 = vand.u32 2147483648, %v601_v4  ;;  %v60_v30 = vld [vmem:[#allocation2 + $0x60] sm:$0xff]  ;;  %v61_v31 = vld [vmem:[#allocation2 + $0x68] sm:$0xff] }
  0x25   :  { %v175_v41 = vmul.f32 %v606_v6, %v155_v32  ;;  %v341_v42 = vor.u32 %v340_v34, %v339_v33  ;;  %vm632_vm7 = vcmp.lt.f32.partialorder %v343_v35, 8388608.0  ;;  %v346_v45 = vcvt.s32.f32 %v345_v12  ;;  %v62_v12 = vld [vmem:[#allocation2 + $0x70] sm:$0xff] }
  0x26   :  { %244 = vst [vmem:[#allocation7] sm:$0xff] %v243_v37   ;;  %v141_v44 = vmin.f32 %v125_v38, 255.0  ;;  %v77_v47 = vmul.f32 %v541_v2, %v56_v36  ;;  %v176_v50 = vmul.f32 %v606_v6, %v156_v39  ;;  %v78_v52 = vmul.f32 %v541_v2, %v57_v40 }
  0x27   :  { %v248_v49 = vpack.c.bf16 %v175_v41, %v174_v29  ;;  %v342_v51 = vsel %vm616_vm6, %v341_v42, %v75_v63  ;;  %v347_v54 = vand.u32 2147483647, %v346_v45  ;;  %v79_v61 = vmul.f32 %v541_v2, %v58_v48 }
  0x28   :  { %v157_v53 = vsub.f32 %v141_v44, %v564_v26  ;;  %v110_v55 = vadd.f32 %v564_v26, %v342_v51  ;;  %v351_v56 = vand.u32 2147483647, %v77_v47  ;;  %v353_v57 = vcvt.f32.s32 %v77_v47 }
  0x29   :  { %280 = vst [vmem:[#allocation7 + $0x8] sm:$0xff] %v248_v49   ;;  %v356_v58 = vand.u32 2147483648, %v77_v47  ;;  %v361_v59 = vcvt.f32.s32 %v78_v52  ;;  %v349_v0 = vor.u32 %v348_v46, %v347_v54  ;;  %v359_v63 = vand.u32 2147483647, %v78_v52 }
  0x2a   :  { %v177_v62 = vmul.f32 %v606_v6, %v157_v53  ;;  %v126_v1 = vmax.f32 %v110_v55, 0.0  ;;  %vm646_vm8 = vcmp.lt.f32.partialorder %v351_v56, 8388608.0  ;;  %v354_v5 = vcvt.s32.f32 %v353_v57 }
  0x2b   :  { %v362_v7 = vcvt.s32.f32 %v361_v59  ;;  %v364_v8 = vand.u32 2147483648, %v78_v52  ;;  %v350_v13 = vsel %vm632_vm7, %v349_v0, %v601_v4  ;;  %v80_v10 = vmul.f32 %v541_v2, %v59_v60 }
  0x2c   :  { %v253_v9 = vpack.c.bf16 %v177_v62, %v176_v50  ;;  %v142_v14 = vmin.f32 %v126_v1, 255.0  ;;  %v111_v15 = vadd.f32 %v564_v26, %v350_v13  ;;  %v355_v16 = vand.u32 2147483647, %v354_v5 }
  0x2d   :  { %v363_v17 = vand.u32 2147483647, %v362_v7  ;;  %v367_v18 = vand.u32 2147483647, %v79_v61  ;;  %vm656_vm9 = vcmp.lt.f32.partialorder %v359_v63, 8388608.0  ;;  %v369_v21 = vcvt.f32.s32 %v79_v61  ;;  %v63_v7 = vld [vmem:[#allocation2 + $0x78] sm:$0xff] }
  0x2e   :  { %281 = vst [vmem:[#allocation7 + $0x10] sm:$0xff] %v253_v9   ;;  %v158_v19 = vsub.f32 %v142_v14, %v564_v26  ;;  %v372_v22 = vand.u32 2147483648, %v79_v61  ;;  %v127_v23 = vmax.f32 %v111_v15, 0.0  ;;  %v357_v11 = vor.u32 %v356_v58, %v355_v16 }
  0x2f   :  { %v365_v4 = vor.u32 %v364_v8, %v363_v17  ;;  %v375_v24 = vand.u32 2147483647, %v80_v10  ;;  %vm661_vm10 = vcmp.lt.f32.partialorder %v367_v18, 8388608.0  ;;  %v370_v28 = vcvt.s32.f32 %v369_v21 }
  0x30   :  { %v178_v25 = vmul.f32 %v606_v6, %v158_v19  ;;  %v377_v29 = vcvt.f32.s32 %v80_v10  ;;  %v143_v32 = vmin.f32 %v127_v23, 255.0  ;;  %v358_v33 = vsel %vm646_vm8, %v357_v11, %v77_v47 }
  0x31   :  { %v366_v34 = vsel %vm656_vm9, %v365_v4, %v78_v52  ;;  %v380_v35 = vand.u32 2147483648, %v80_v10  ;;  %v112_v36 = vadd.f32 %v564_v26, %v358_v33  ;;  %v371_v38 = vand.u32 2147483647, %v370_v28 }
  0x32   :  { %v113_v37 = vadd.f32 %v564_v26, %v366_v34  ;;  %v378_v39 = vcvt.s32.f32 %v377_v29  ;;  %v159_v40 = vsub.f32 %v143_v32, %v564_v26  ;;  %vm672_vm11 = vcmp.lt.f32.partialorder %v375_v24, 8388608.0 }
  0x33   :  { %v81_v42 = vmul.f32 %v541_v2, %v60_v30  ;;  %v82_v43 = vmul.f32 %v541_v2, %v61_v31  ;;  %v128_v44 = vmax.f32 %v112_v36, 0.0  ;;  %v373_v46 = vor.u32 %v372_v22, %v371_v38 }
  0x34   :  { %v129_v45 = vmax.f32 %v113_v37, 0.0  ;;  %v379_v47 = vand.u32 2147483647, %v378_v39  ;;  %v179_v48 = vmul.f32 %v606_v6, %v159_v40  ;;  %v680_v51 = vmul.f32 %v541_v2, %v62_v12 }
  0x35   :  { %v383_v49 = vand.u32 2147483647, %v81_v42  ;;  %v385_v50 = vcvt.f32.s32 %v81_v42  ;;  %v144_v52 = vmin.f32 %v128_v44, 255.0  ;;  %v374_v54 = vsel %vm661_vm10, %v373_v46, %v79_v61 }
  0x36   :  { %v145_v53 = vmin.f32 %v129_v45, 255.0  ;;  %v381_v55 = vor.u32 %v380_v35, %v379_v47  ;;  %v258_v56 = vpack.c.bf16 %v179_v48, %v178_v25  ;;  %v114_v57 = vadd.f32 %v564_v26, %v374_v54 }
  0x37   :  { %v386_v58 = vcvt.s32.f32 %v385_v50  ;;  %v388_v59 = vand.u32 2147483648, %v81_v42  ;;  %v160_v60 = vsub.f32 %v144_v52, %v564_v26  ;;  %vm689_vm12 = vcmp.lt.f32.partialorder %v383_v49, 8388608.0 }
  0x38   :  { %v161_v62 = vsub.f32 %v145_v53, %v564_v26  ;;  %v382_v0 = vsel %vm672_vm11, %v381_v55, %v80_v10  ;;  %282 = vst [vmem:[#allocation7 + $0x18] sm:$0xff] %v258_v56   ;;  %v130_v63 = vmax.f32 %v114_v57, 0.0  ;;  %v393_v5 = vcvt.f32.s32 %v82_v43 }
  0x39   :  { %v115_v61 = vadd.f32 %v564_v26, %v382_v0  ;;  %v387_v3 = vand.u32 2147483647, %v386_v58  ;;  %v180_v8 = vmul.f32 %v606_v6, %v160_v60  ;;  %v391_v13 = vand.u32 2147483647, %v82_v43 }
  0x3a   :  { %v181_v9 = vmul.f32 %v606_v6, %v161_v62  ;;  %v396_v14 = vand.u32 2147483648, %v82_v43  ;;  %v146_v16 = vmin.f32 %v130_v63, 255.0  ;;  %v394_v17 = vcvt.s32.f32 %v393_v5 }
  0x3b   :  { %v131_v15 = vmax.f32 %v115_v61, 0.0  ;;  %v389_v10 = vor.u32 %v388_v59, %v387_v3  ;;  %v84_v19 = vmul.f32 %v541_v2, %v63_v7  ;;  %v399_v20 = vand.u32 2147483647, %v680_v51 }
  0x3c   :  { %v263_v18 = vpack.c.bf16 %v181_v9, %v180_v8  ;;  %v401_v21 = vcvt.f32.s32 %v680_v51  ;;  %v162_v23 = vsub.f32 %v146_v16, %v564_v26  ;;  %v395_v4 = vand.u32 2147483647, %v394_v17 }
  0x3d   :  { %v147_v22 = vmin.f32 %v131_v15, 255.0  ;;  %v390_v11 = vsel %vm689_vm12, %v389_v10, %v81_v42  ;;  %vm392_vm13 = vcmp.lt.f32.partialorder %v391_v13, 8388608.0  ;;  %v404_v27 = vand.u32 2147483648, %v680_v51 }
  0x3e   :  { %283 = vst [vmem:[#allocation7 + $0x20] sm:$0xff] %v263_v18   ;;  %v116_v24 = vadd.f32 %v564_v26, %v390_v11  ;;  %v402_v25 = vcvt.s32.f32 %v401_v21  ;;  %v182_v28 = vmul.f32 %v606_v6, %v162_v23  ;;  %v397_v29 = vor.u32 %v396_v14, %v395_v4 }
  0x3f   :  { %v163_v2 = vsub.f32 %v147_v22, %v564_v26  ;;  %vm706_vm14 = vcmp.lt.f32.partialorder %v399_v20, 8388608.0  ;;  %v409_v33 = vcvt.f32.s32 %v84_v19  ;;  %v407_v36 = vand.u32 2147483647, %v84_v19 }
  0x40   :  { %v132_v30 = vmax.f32 %v116_v24, 0.0  ;;  %v403_v32 = vand.u32 2147483647, %v402_v25  ;;  %v398_v35 = vsel %vm392_vm13, %v397_v29, %v82_v43  ;;  %v412_v37 = vand.u32 2147483648, %v84_v19 }
  0x41   :  { %v183_v34 = vmul.f32 %v606_v6, %v163_v2  ;;  %v117_v38 = vadd.f32 %v564_v26, %v398_v35  ;;  %v410_v40 = vcvt.s32.f32 %v409_v33  ;;  %vm408_vm15 = vcmp.lt.f32.partialorder %v407_v36, 8388608.0 }
  0x42   :  { %v148_v39 = vmin.f32 %v132_v30, 255.0  ;;  %v405_v12 = vor.u32 %v404_v27, %v403_v32 }
  0x43   :  { %v268_v41 = vpack.c.bf16 %v183_v34, %v182_v28  ;;  %v133_v42 = vmax.f32 %v117_v38, 0.0  ;;  %v411_v46 = vand.u32 2147483647, %v410_v40 }
  0x44   :  { %v164_v44 = vsub.f32 %v148_v39, %v564_v26  ;;  %v406_v45 = vsel %vm706_vm14, %v405_v12, %v680_v51 }
  0x45   :  { %284 = vst [vmem:[#allocation7 + $0x28] sm:$0xff] %v268_v41   ;;  %v118_v43 = vadd.f32 %v564_v26, %v406_v45  ;;  %v149_v47 = vmin.f32 %v133_v42, 255.0  ;;  %v413_v48 = vor.u32 %v412_v37, %v411_v46 }
  0x46   :  { %v184_v52 = vmul.f32 %v606_v6, %v164_v44 }
  0x47   :  { %v134_v49 = vmax.f32 %v118_v43, 0.0  ;;  %v165_v50 = vsub.f32 %v149_v47, %v564_v26  ;;  %v414_v53 = vsel %vm408_vm15, %v413_v48, %v84_v19 }
  0x48   :  { %v119_v54 = vadd.f32 %v564_v26, %v414_v53 }
  0x49   :  { %v150_v55 = vmin.f32 %v134_v49, 255.0  ;;  %v185_v56 = vmul.f32 %v606_v6, %v165_v50 }
  0x4a   :  { %v135_v57 = vmax.f32 %v119_v54, 0.0 }
  0x4b   :  { %v166_v51 = vsub.f32 %v150_v55, %v564_v26  ;;  %v273_v58 = vpack.c.bf16 %v185_v56, %v184_v52 }
  0x4c   :  { %v151_v59 = vmin.f32 %v135_v57, 255.0 }
  0x4d   :  { %285 = vst [vmem:[#allocation7 + $0x30] sm:$0xff] %v273_v58   ;;  %v186_v62 = vmul.f32 %v606_v6, %v166_v51 }
  0x4e   :  { %v167_v60 = vsub.f32 %v151_v59, %v564_v26 }
  0x50   :  { %v187_v0 = vmul.f32 %v606_v6, %v167_v60 }
  0x52   :  { %v278_v1 = vpack.c.bf16 %v187_v0, %v186_v62 }
  0x54   :  { %286 = vst [vmem:[#allocation7 + $0x38] sm:$0xff] %v278_v1  }
  0x55   :  { %232 = dma.vmem_to_hbm [thread:$0]  %s225_s28, 1024, %s227_s5, [#allocation4], %s508_s6, %s508_s6, %s509_s7  }
  0x56   :  { %501 = dma.done.wait [#allocation4], 1024  }
  0x57   :  { %502 = vsyncadd [#allocation4], 4294966272 }
  0x58   :  { %237 = vsyncpa [#allocation3], 1 }
  0x59   :  { %238 = vsyncpa [#allocation6], 1 }
  0x5a   :  { %239 = vsyncpa [#allocation4], 1 }

</bundles_post_ra>
